<compile_context>
chip_gen: v7x
topology: tpu7x:2x2x1
jax: 0.10.0
libtpu: 0.0.40
codegen_flags: <defaults>
</compile_context>

<pallas_src>
import functools

import jax
import jax.numpy as jnp
from jax import lax
from jax.experimental import pallas as pl
from jax.experimental.pallas import tpu as pltpu


def _local_contrast_kernel(x_ref, o_ref, *, h, w):
    # x_ref / o_ref: (1, TC, H*W) block. Lane axis = flattened image (H*W),
    # sublane axis = channel tile. Everything below is per-channel independent.
    x = x_ref[...].astype(jnp.float32)
    hw = h * w

    # Boundary masks (0/1 f32), shape (1, 1, HW); broadcast over channels.
    li = lax.broadcasted_iota(jnp.int32, (1, 1, hw), 2)
    wp = li % w
    m_top = (li >= w).astype(jnp.float32)        # kill wrap from bottom row
    m_bot = (li < hw - w).astype(jnp.float32)    # kill wrap from top row
    m_lft = (wp != 0).astype(jnp.float32)        # kill wrap across row start
    m_rgt = (wp != w - 1).astype(jnp.float32)    # kill wrap across row end

    def box_mean(v):
        # Separable 3x3 average with zero padding: column (H) pass then row
        # (W) pass, each as two circular lane rolls + boundary masks.
        up = pltpu.roll(v, shift=w, axis=2) * m_top
        dn = pltpu.roll(v, shift=hw - w, axis=2) * m_bot
        rs = v + up + dn
        lf = pltpu.roll(rs, shift=1, axis=2) * m_lft
        rt = pltpu.roll(rs, shift=hw - 1, axis=2) * m_rgt
        return (rs + lf + rt) * jnp.float32(1.0 / 9.0)

    x_avg = box_mean(x)
    d = x - x_avg
    o_ref[...] = box_mean(d * d).astype(o_ref.dtype)


def _pick_block_c(n, c, hw):
    """Channel-tile size: VMEM-budget aware, sublane-legal, pipeline-friendly."""
    f32 = 4
    budget = 24 << 20   # live-bytes budget; conservative for v7x's 64 MiB VMEM
    k_live = 10         # 2x double-buffered in + 2x out + ~6 live f32 temps
    cap = max(1, budget // (k_live * hw * f32))
    if c < 8:
        return c        # sublane block dim must equal full C when C < 8
    block_c = c if cap >= c else max(8, (min(cap, c) // 8) * 8)
    # Give the software pipeline (and both v7x TensorCores) enough grid steps.
    min_steps = 8
    while block_c > 8 and n * ((c + block_c - 1) // block_c) < min_steps:
        block_c = max(8, ((block_c // 2) // 8) * 8)
    return block_c


def local_contrast_block(x_nchw, *, block_c=None):
    """x_nchw: (N, C, H, W), PyTorch layout. Returns (N, C, H, W)."""
    n, c, h, w = x_nchw.shape
    hw = h * w
    if block_c is None:
        block_c = _pick_block_c(n, c, hw)
    grid_c = pl.cdiv(c, block_c)  # non-divisor block_c OK: channels independent

    # Free contiguous reshape: put H*W on the lane axis (lane-dense stores).
    x_flat = x_nchw.reshape(n, c, hw)

    itemsize = jnp.dtype(x_nchw.dtype).itemsize
    cost = pl.CostEstimate(
        flops=28 * n * c * hw,                # ~20 VPU + 8 roll ops / element
        transcendentals=0,
        bytes_accessed=2 * n * c * hw * itemsize,
    )
    live_bytes = 10 * block_c * hw * 4
    vmem_limit = min(64 << 20, max(32 << 20, int(live_bytes * 1.5)))

    out = pl.pallas_call(
        functools.partial(_local_contrast_kernel, h=h, w=w),
        out_shape=jax.ShapeDtypeStruct((n, c, hw), x_nchw.dtype),
        grid_spec=pltpu.PrefetchScalarGridSpec(
            num_scalar_prefetch=0,
            grid=(n, grid_c),
            in_specs=[pl.BlockSpec((1, block_c, hw), lambda i, j: (i, j, 0))],
            out_specs=pl.BlockSpec((1, block_c, hw), lambda i, j: (i, j, 0)),
        ),
        compiler_params=pltpu.CompilerParams(
            dimension_semantics=("parallel", "parallel"),
            vmem_limit_bytes=vmem_limit),
        cost_estimate=cost,
    )(x_flat)
    return out.reshape(n, c, h, w)


def _reference(x_nchw):
    """Pure-JAX reference matching the PyTorch module exactly."""
    n, c, h, w = x_nchw.shape
    wgt = jnp.full((c, 1, 3, 3), 1.0 / 9.0, x_nchw.dtype)

    def conv(v):
        return lax.conv_general_dilated(
            v, wgt, window_strides=(1, 1), padding=((1, 1), (1, 1)),
            dimension_numbers=("NCHW", "OIHW", "NCHW"),
            feature_group_count=c)

    x_avg = conv(x_nchw)
    d = x_nchw - x_avg
    return conv(d * d)


if __name__ == "__main__":
    key = jax.random.PRNGKey(0)
    # NCHW, matching the PyTorch conv input convention.
    x = jax.random.normal(key, (2, 4, 16, 16), dtype=jnp.float32)
    out = jax.block_until_ready(local_contrast_block(x))
    ref = _reference(x)
    assert out.shape == ref.shape == x.shape
    assert jnp.allclose(out, ref, atol=1e-5, rtol=1e-5), (
        float(jnp.max(jnp.abs(out - ref))))

    # Also exercise the non-divisor (cdiv) channel-tiling path.
    x2 = jax.random.normal(jax.random.PRNGKey(1), (1, 12, 8, 16), jnp.float32)
    out2 = jax.block_until_ready(local_contrast_block(x2))
    ref2 = _reference(x2)
    assert jnp.allclose(out2, ref2, atol=1e-5, rtol=1e-5), (
        float(jnp.max(jnp.abs(out2 - ref2))))

    print("KERNEL_OK")
</pallas_src>

<mosaic_0001>
module attributes {stable_mosaic.version = 11 : i64} {
  func.func @_local_contrast_kernel(%arg0: i32, %arg1: i32, %arg2: memref<1x4x256xf32, #tpu.memory_space<vmem>>, %arg3: memref<1x4x256xf32, #tpu.memory_space<vmem>>) attributes {dimension_semantics = [#tpu.dimension_semantics<parallel>, #tpu.dimension_semantics<parallel>], iteration_bounds = array<i64: 2, 1>, scalar_prefetch = 0 : i64, scratch_operands = 0 : i64, tpu.core_type = #tpu.core_type<tc>, window_params = [{transform_indices = @transform_0, window_bounds = array<i64: 1, 4, 256>}, {transform_indices = @transform_1, window_bounds = array<i64: 1, 4, 256>}]} {
    %c0 = arith.constant 0 : index
    %c0_0 = arith.constant 0 : index
    %c0_1 = arith.constant 0 : index
    %0 = vector.load %arg2[%c0, %c0_0, %c0_1] : memref<1x4x256xf32, #tpu.memory_space<vmem>>, vector<1x4x256xf32>
    %1 = tpu.iota {dimensions = array<i32: 2>} : vector<1x1x256xi32>
    %c16_i32 = arith.constant 16 : i32
    %c0_i32 = arith.constant 0 : i32
    %2 = arith.cmpi eq, %c16_i32, %c0_i32 : i32
    %c1_i32 = arith.constant 1 : i32
    %3 = arith.select %2, %c1_i32, %c16_i32 : i32
    %4 = vector.broadcast %3 : i32 to vector<1x1x256xi32>
    %5 = arith.remsi %1, %4 : vector<1x1x256xi32>
    %c0_i32_2 = arith.constant 0 : i32
    %6 = vector.broadcast %c0_i32_2 : i32 to vector<1x1x256xi32>
    %7 = arith.cmpi ne, %5, %6 : vector<1x1x256xi32>
    %c0_i32_3 = arith.constant 0 : i32
    %8 = vector.broadcast %c0_i32_3 : i32 to vector<1x1x256xi32>
    %9 = arith.cmpi slt, %5, %8 : vector<1x1x256xi32>
    %c0_i32_4 = arith.constant 0 : i32
    %10 = arith.cmpi slt, %3, %c0_i32_4 : i32
    %11 = vector.broadcast %10 : i1 to vector<1x1x256xi1>
    %12 = vector.broadcast %11 : vector<1x1x256xi1> to vector<1x1x256xi1>
    %13 = arith.xori %9, %12 : vector<1x1x256xi1>
    %14 = arith.andi %13, %7 : vector<1x1x256xi1>
    %15 = vector.broadcast %3 : i32 to vector<1x1x256xi32>
    %16 = arith.addi %5, %15 : vector<1x1x256xi32>
    %17 = arith.select %14, %16, %5 : vector<1x1x256xi1>, vector<1x1x256xi32>
    %c16_i32_5 = arith.constant 16 : i32
    %18 = vector.broadcast %c16_i32_5 : i32 to vector<1x1x256xi32>
    %19 = arith.cmpi sge, %1, %18 : vector<1x1x256xi32>
    %20 = arith.extui %19 : vector<1x1x256xi1> to vector<1x1x256xi32>
    %21 = arith.sitofp %20 : vector<1x1x256xi32> to vector<1x1x256xf32>
    %c240_i32 = arith.constant 240 : i32
    %22 = vector.broadcast %c240_i32 : i32 to vector<1x1x256xi32>
    %23 = arith.cmpi slt, %1, %22 : vector<1x1x256xi32>
    %24 = arith.extui %23 : vector<1x1x256xi1> to vector<1x1x256xi32>
    %25 = arith.sitofp %24 : vector<1x1x256xi32> to vector<1x1x256xf32>
    %c0_i32_6 = arith.constant 0 : i32
    %26 = vector.broadcast %c0_i32_6 : i32 to vector<1x1x256xi32>
    %27 = arith.cmpi ne, %17, %26 : vector<1x1x256xi32>
    %28 = arith.extui %27 : vector<1x1x256xi1> to vector<1x1x256xi32>
    %29 = arith.sitofp %28 : vector<1x1x256xi32> to vector<1x1x256xf32>
    %c15_i32 = arith.constant 15 : i32
    %30 = vector.broadcast %c15_i32 : i32 to vector<1x1x256xi32>
    %31 = arith.cmpi ne, %17, %30 : vector<1x1x256xi32>
    %32 = arith.extui %31 : vector<1x1x256xi1> to vector<1x1x256xi32>
    %33 = arith.sitofp %32 : vector<1x1x256xi32> to vector<1x1x256xf32>
    %c16_i32_7 = arith.constant 16 : i32
    %34 = tpu.dynamic_rotate %0 by %c16_i32_7 dim 2 : vector<1x4x256xf32>, i32 -> vector<1x4x256xf32>
    %35 = vector.broadcast %21 : vector<1x1x256xf32> to vector<1x4x256xf32>
    %36 = arith.mulf %34, %35 : vector<1x4x256xf32>
    %c240_i32_8 = arith.constant 240 : i32
    %37 = tpu.dynamic_rotate %0 by %c240_i32_8 dim 2 : vector<1x4x256xf32>, i32 -> vector<1x4x256xf32>
    %38 = vector.broadcast %25 : vector<1x1x256xf32> to vector<1x4x256xf32>
    %39 = arith.mulf %37, %38 : vector<1x4x256xf32>
    %40 = arith.addf %0, %36 : vector<1x4x256xf32>
    %41 = arith.addf %40, %39 : vector<1x4x256xf32>
    %c1_i32_9 = arith.constant 1 : i32
    %42 = tpu.dynamic_rotate %41 by %c1_i32_9 dim 2 : vector<1x4x256xf32>, i32 -> vector<1x4x256xf32>
    %43 = vector.broadcast %29 : vector<1x1x256xf32> to vector<1x4x256xf32>
    %44 = arith.mulf %42, %43 : vector<1x4x256xf32>
    %c255_i32 = arith.constant 255 : i32
    %45 = tpu.dynamic_rotate %41 by %c255_i32 dim 2 : vector<1x4x256xf32>, i32 -> vector<1x4x256xf32>
    %46 = vector.broadcast %33 : vector<1x1x256xf32> to vector<1x4x256xf32>
    %47 = arith.mulf %45, %46 : vector<1x4x256xf32>
    %48 = arith.addf %41, %44 : vector<1x4x256xf32>
    %49 = arith.addf %48, %47 : vector<1x4x256xf32>
    %cst = arith.constant 0.111111112 : f32
    %50 = vector.broadcast %cst : f32 to vector<1x4x256xf32>
    %51 = arith.mulf %49, %50 : vector<1x4x256xf32>
    %52 = arith.subf %0, %51 : vector<1x4x256xf32>
    %53 = arith.mulf %52, %52 : vector<1x4x256xf32>
    %c16_i32_10 = arith.constant 16 : i32
    %54 = tpu.dynamic_rotate %53 by %c16_i32_10 dim 2 : vector<1x4x256xf32>, i32 -> vector<1x4x256xf32>
    %55 = vector.broadcast %21 : vector<1x1x256xf32> to vector<1x4x256xf32>
    %56 = arith.mulf %54, %55 : vector<1x4x256xf32>
    %c240_i32_11 = arith.constant 240 : i32
    %57 = tpu.dynamic_rotate %53 by %c240_i32_11 dim 2 : vector<1x4x256xf32>, i32 -> vector<1x4x256xf32>
    %58 = vector.broadcast %25 : vector<1x1x256xf32> to vector<1x4x256xf32>
    %59 = arith.mulf %57, %58 : vector<1x4x256xf32>
    %60 = arith.addf %53, %56 : vector<1x4x256xf32>
    %61 = arith.addf %60, %59 : vector<1x4x256xf32>
    %c1_i32_12 = arith.constant 1 : i32
    %62 = tpu.dynamic_rotate %61 by %c1_i32_12 dim 2 : vector<1x4x256xf32>, i32 -> vector<1x4x256xf32>
    %63 = vector.broadcast %29 : vector<1x1x256xf32> to vector<1x4x256xf32>
    %64 = arith.mulf %62, %63 : vector<1x4x256xf32>
    %c255_i32_13 = arith.constant 255 : i32
    %65 = tpu.dynamic_rotate %61 by %c255_i32_13 dim 2 : vector<1x4x256xf32>, i32 -> vector<1x4x256xf32>
    %66 = vector.broadcast %33 : vector<1x1x256xf32> to vector<1x4x256xf32>
    %67 = arith.mulf %65, %66 : vector<1x4x256xf32>
    %68 = arith.addf %61, %64 : vector<1x4x256xf32>
    %69 = arith.addf %68, %67 : vector<1x4x256xf32>
    %cst_14 = arith.constant 0.111111112 : f32
    %70 = vector.broadcast %cst_14 : f32 to vector<1x4x256xf32>
    %71 = arith.mulf %69, %70 : vector<1x4x256xf32>
    %c0_15 = arith.constant 0 : index
    %c0_16 = arith.constant 0 : index
    %c0_17 = arith.constant 0 : index
    %72 = vector.load %arg3[%c0_15, %c0_16, %c0_17] : memref<1x4x256xf32, #tpu.memory_space<vmem>>, vector<1x4x256xf32>
    tpu.vector_store %arg3[%c0_15, %c0_16, %c0_17], %71 {strides = array<i32>} : memref<1x4x256xf32, #tpu.memory_space<vmem>>, vector<1x4x256xf32>,
    return
  }
  func.func @transform_0(%arg0: i32, %arg1: i32) -> (i32, i32, i32) {
    %c0_i32 = arith.constant 0 : i32
    %c0_i32_0 = arith.constant 0 : i32
    return %arg0, %arg1, %c0_i32 : i32, i32, i32
  }
  func.func @transform_1(%arg0: i32, %arg1: i32) -> (i32, i32, i32) {
    %c0_i32 = arith.constant 0 : i32
    %c0_i32_0 = arith.constant 0 : i32
    return %arg0, %arg1, %c0_i32 : i32, i32, i32
  }
}

</mosaic_0001>

<bundles_post_ra>
// kernel: tpu_custom_call.1
= control target key start
LH: loop header
LB: loop body
LE: loop exit
PB: predicated region body
PF: predicated region fallthrough
CT: control target
= control target key end

     0   :  { %6 = vsyncpa [#allocation3], 0  ;;  %s896_s0 = inlined_call_operand.hbm [shape: f32[2,4,256], index: 0, kind: input, shape index: {}]   ;;  %s897_s1 = inlined_call_operand.hbm [shape: f32[2,4,256], index: 1, kind: output, shape index: {}]  }
   0x1   :  { %8 = vsyncpa [#allocation3 + $0x1], 0 }
   0x2   :  { %9 = vsyncpa [#allocation4], 0 }
   0x3   :  { %11 = vsyncpa [#allocation4 + $0x1], 0  ;;  %s651_s6 = smov 0   ;;  %s653_s7 = smov 0  }
   0x4   :  { %s655_s8 = smov 0   ;;  %s657_s9 = smov 0  }
   0x5   :  { %s659_s10 = smov 0   ;;  %s661_s11 = smov 0  }
   0x6 LB: > { %s429_s12 = sadd.s32 4294967295, %s632_s11   ;;  %s430_s13 = sadd.s32 4294967294, %s632_s11   ;;  %s632_s11 = sphi %s661_s11, %s17_s11   ;;  %s628_s10 = sphi %s659_s10, %s913_s10   ;;  %s624_s9 = sphi %s657_s9, %s912_s9   ;;  %s620_s8 = sphi %s655_s8, %s911_s8   ;;  %s616_s7 = sphi %s653_s7, %s910_s7   ;;  %s612_s6 = sphi %s651_s6, %s909_s6  }
   0x7   : > { %s29_s14 = sadd.s32 1, %s628_s10  ;;  %s38_s15 = sadd.s32 1, %s620_s8 }
   0x8   : > { %p31_p0 = scmp.ge.s32.totalorder %s29_s14, 2  ;;  %p45_p1 = scmp.ne.s32.totalorder %s620_s8, %s616_s7 }
   0x9   : > { %p46_p2 = scmp.eq.s32.totalorder %s632_s11, 0  ;;  %p51_p3 = scmp.ne.s32.totalorder %s616_s7, %s612_s6 }
   0xa   : > { %s915_s14 = smov (%p31_p0, %s29_s14), 0  ;;  %p52_p5 = scmp.eq.s32.totalorder %s429_s12, 0 }
   0xb   : > { %p692_p4 = por %p46_p2, %p45_p1  ;;  %s33_s17 = ssub.s32 %s628_s10, %s915_s14 }
   0xc   : > { %p77_p6 = scmp.eq.s32.totalorder %s429_s12, 1  ;;  %p36_p7 = scmp.eq.s32.totalorder %s33_s17, 0 }
   0xd   : > { %p698_p8 = por %p52_p5, %p51_p3  ;;  %p83_p10 = scmp.eq.s32.totalorder %s430_s13, 1 }
   0xe   : > { %p702_p9 = por %p77_p6, %p45_p1  ;;  %p464_p13 = scmp.lt.s32.totalorder %s632_s11, 2 }
   0xf   : > { %s707_s20 = scalar_select %p36_p7, %s620_s8, %s38_s15  }
  0x10   : > { %s901_s19 = scalar_select %p702_p9, 1, 0 }
  0x11   : > { %p709_p11 = por %p83_p10, %p51_p3  ;;  %s103_s22 = sand.u32 1, %s620_s8  }
  0x12   : > { %s433_s23 = sshll.u32 %s103_s22, 3  ;;  %s450_s24 = sshll.u32 %s628_s10, 7 }
  0x13   : > { %s902_s21 = scalar_select %p709_p11, 1, 0 }
  0x14   : > { %s720_s27 = scalar_lea.hbm %s896_s0, %s450_s24  ;;  %s107_s28 = scalar_lea.vmem [#allocation2], %s433_s23 }
  0x15   : > { %s117_s29 = sshll.u32 %s107_s28, 4  ;;  %p726_p0 = pnand %p464_p13, %p692_p4  ;;  %s722_s29 = int_to_ptr.vmem [resolvable:$true] %s117_s29 }
  0x16   : > { %s104_s2 = scalar_lea.sflag [#allocation3], %s103_s22  ;;  %s520_s3 = scalar_lea.hbm %s720_s27, 128 }
  0x17   : > { %p521_p3 = scmp.ne.s32.totalorder %s720_s27, %s520_s3  ;;  %p522_p5 = pneg %p726_p0 }
  0x18   : > { %s525_s12 = scalar_lea.hbm %s896_s0, 256  ;;  %p526_p4 = scmp.lt.u32.totalorder %s720_s27, %s896_s0 }
  0x19   : > { %p523_p6 = pnand %p522_p5, %p521_p3  ;;  %p527_p10 = scmp.lt.u32.totalorder %s525_s12, %s520_s3 }
  0x1a   : > { %p529_p12 = scmp.lt.u32.totalorder %s520_s3, %s720_s27 }
  0x1b   : > { %p524_p7 = pneg %p523_p6  ;;  %p528_p13 = por %p527_p10, %p526_p4 }
  0x1d   : > { %p530_p1 = por %p529_p12, %p528_p13 }
  0x1f   : > { %p531_p2 = pnand %p530_p1, %p524_p7 }
  0x21   : > { %534 = shalt.err (!%p531_p2)
}
  0x22   : > { %s535_s16 = scalar_lea.vmem %s722_s29, 128  ;;  %s634_s17 = smov [#allocation2]  }
  0x23   : > { %p536_p3 = scmp.ne.s32.totalorder %s722_s29, %s535_s16  ;;  %s540_s22 = sshll.u32 %s634_s17, 4  ;;  %s541_s22 = int_to_ptr.vmem [resolvable:$false] %s540_s22 }
  0x24   : > { %s542_s23 = scalar_lea.vmem %s541_s22, 256  ;;  %p543_p9 = scmp.lt.s32.totalorder %s722_s29, %s541_s22 }
  0x25   : > { %p538_p6 = pnand %p536_p3, %p522_p5  ;;  %p544_p4 = scmp.lt.s32.totalorder %s542_s23, %s535_s16 }
  0x27   : > { %p539_p11 = pneg %p538_p6  ;;  %p545_p10 = por %p544_p4, %p543_p9 }
  0x29   : > { %p546_p12 = pnand %p545_p10, %p539_p11 }
  0x2b   : > { %549 = shalt.err (!%p546_p12)
}
  0x2c   : > { %459 = dma.hbm_to_vmem [thread:$0]  (!%p726_p0), %s720_s27, 128, %s722_s29, %s104_s2  }
  0x2d   : > { %p904_p1 = scmp.lt.s32.totalorder %s632_s11, 3  ;;  %p905_p2 = scmp.ge.s32.totalorder %s632_s11, 1 }
  0x2f   : > { %p123_p5 = pnand %p905_p2, %p904_p1 }
  0x30   : > { %s762_s24 = sand.u32 (!%p123_p5), 1, %s616_s7  }
  0x31   : > { %126 = sbr.rel (%p123_p5) target bundleno = 592 (0x250), region = 24  ;;  %s437_s25 = sshll.u32 (!%p123_p5), %s762_s24, 3 }
  0x32   : > { %s129_s26 = scalar_lea.sflag (!%p123_p5), [#allocation3], %s762_s24  ;;  %s132_s28 = scalar_lea.vmem (!%p123_p5), [#allocation2], %s437_s25 }
  0x38   : > { %603 = dma.done.wait (%p698_p8), %s129_s26, 128  }
  0x39   : > { %605 = vsyncadd (%p698_p8), %s129_s26, 4294967168  ;;  %v772_v0 = vld [vmem:[%s132_s28] sm:$0xff]  ;;  %s635_s27 = smov 112   ;;  %s636_s29 = smov 16   ;;  %v152_v2 = vlaneseq  ;;  %v637_v7 = vmov 0.0  }
  0x3a   : > { %215 = vrot.lane.b32.xlu1 %v772_v0, %s635_s27  ;;  %206 = vrot.lane.b32.xlu0 %v772_v0, %s636_s29  ;;  %v204_v1 = vcombine.high %v772_v0, %v772_v0  ;;  %s638_s18 = smov 1   ;;  %s639_s30 = smov 127  }
  0x3b   : > { %v782_v3 = vand.u32 127, %v152_v2  ;;  %s451_s2 = sshll.u32 %s624_s9, 7  ;;  %s150_s3 = scalar_lea.vmem [#allocation5], %s437_s25 }
  0x3c   : > { %s345_s4 = sshll.u32 %s150_s3, 4  ;;  %s847_s13 = scalar_lea.hbm %s897_s1, %s451_s2  ;;  %s849_s4 = int_to_ptr.vmem [resolvable:$true] %s345_s4 }
  0x3d   : > { %v154_v4 = vadd.s32 128, %v782_v3  ;;  %vm179_vm1 = vcmp.ge.s32.totalorder %v782_v3, 16  ;;  %vm219_vm2 = vcmp.lt.s32.totalorder %v782_v3, 112  ;;  %vm210_vm3 = vcmp.lt.s32.totalorder %v782_v3, 16  ;;  %s329_s15 = scalar_lea.sflag [#allocation4], %s762_s24  ;;  %s550_s16 = scalar_lea.vmem %s849_s4, 128 }
  0x3e   : > { %217 = vrot.lane.b32.xlu1 %v204_v1, %s635_s27  ;;  %208 = vrot.lane.b32.xlu0 %v204_v1, %s636_s29  ;;  %v439_v9 = vsel %vm179_vm1, 1.0, %v637_v7  ;;  %v159_v23 = vand.u32 15, %v782_v3  ;;  %vm241_vm6 = vcmp.lt.s32.totalorder %v782_v3, 1  ;;  %vm250_vm9 = vcmp.lt.s32.totalorder %v782_v3, 127  ;;  %p551_p8 = scmp.ne.s32.totalorder %s849_s4, %s550_s16  ;;  %p906_p9 = scmp.ne.s32.totalorder %s901_s19, 0 }
  0x3f   : > { %vm186_vm0 = vcmp.lt.s32.totalorder %v154_v4, 240  ;;  %v166_v24 = vand.u32 15, %v154_v4  ;;  %s640_s9 = smov [#allocation5]  }
  0x40   : > { %v788_v8 = vsel %vm186_vm0, 1.0, %v637_v7  ;;  %vm191_vm4 = vcmp.ne.s32.totalorder %v159_v23, 0  ;;  %vm197_vm7 = vcmp.ne.s32.totalorder %v159_v23, 15  ;;  %p552_p11 = pnand %p551_p8, %p906_p9  ;;  %s554_s17 = sshll.u32 %s640_s9, 4  ;;  %s555_s17 = int_to_ptr.vmem [resolvable:$false] %s554_s17 }
  0x41   : > { %vm192_vm5 = vcmp.ne.s32.totalorder %v166_v24, 0  ;;  %v441_v26 = vsel %vm191_vm4, 1.0, %v637_v7  ;;  %vm198_vm8 = vcmp.ne.s32.totalorder %v166_v24, 15  ;;  %v443_v33 = vsel %vm197_vm7, 1.0, %v637_v7  ;;  %s556_s22 = scalar_lea.vmem %s555_s17, 256  ;;  %p557_p7 = scmp.lt.s32.totalorder %s849_s4, %s555_s17 }
  0x42   : > { %v442_v27 = vsel %vm192_vm5, 1.0, %v637_v7  ;;  %v444_v34 = vsel %vm198_vm8, 1.0, %v637_v7  ;;  %p553_p0 = pneg %p552_p11  ;;  %p558_p13 = scmp.lt.s32.totalorder %s556_s22, %s550_s16 }
  0x44   : > { %p559_p3 = por %p558_p13, %p557_p7 }
  0x46   : > { %p560_p6 = pnand %p559_p3, %p553_p0 }
  0xac   : > { %v216_v5 = vpop.permute.xlu1 %215  ;;  %v207_v6 = vpop.permute.xlu0 %206 }
  0xb0   : > { %v218_v10 = vpop.permute.xlu1 %217  ;;  %v209_v11 = vpop.permute.xlu0 %208 }
  0xb1   : > { %v221_v12 = vsel %vm219_vm2, %v218_v10, %v216_v5  ;;  %v212_v13 = vsel %vm210_vm3, %v209_v11, %v207_v6  ;;  %v211_v16 = vsel %vm210_vm3, %v207_v6, %v209_v11  ;;  %v220_v18 = vsel %vm219_vm2, %v216_v5, %v218_v10 }
  0xb2   : > { %v223_v14 = vmul.f32 %v788_v8, %v221_v12  ;;  %v213_v15 = vmul.f32 %v439_v9, %v212_v13 }
  0xb4   : > { %v226_v17 = vcombine.low %v213_v15, %v211_v16  ;;  %v231_v19 = vcombine.low %v220_v18, %v223_v14 }
  0xb6   : > { %v228_v20 = vadd.f32 %v226_v17, %v772_v0 }
  0xb8   : > { %v233_v21 = vadd.f32 %v231_v19, %v228_v20 }
  0xba   : > { %237 = vrot.lane.b32.xlu0 %v233_v21, %s638_s18  ;;  %v235_v22 = vcombine.high %v233_v21, %v233_v21 }
  0xbc   : > { %239 = vrot.lane.b32.xlu1 %v235_v22, %s638_s18 }
  0xbe   : > { %246 = vrot.lane.b32.xlu0 %v233_v21, %s639_s30 }
  0xc0   : > { %248 = vrot.lane.b32.xlu1 %v235_v22, %s639_s30 }
 0x12c   : > { %v238_v25 = vpop.permute.xlu0 %237 }
 0x12e   : > { %v240_v28 = vpop.permute.xlu1 %239 }
 0x12f   : > { %v242_v29 = vsel %vm241_vm6, %v238_v25, %v240_v28  ;;  %v243_v30 = vsel %vm241_vm6, %v240_v28, %v238_v25 }
 0x130   : > { %v244_v31 = vmul.f32 %v441_v26, %v243_v30  ;;  %v245_v32 = vmul.f32 %v442_v27, %v242_v29  ;;  %v247_v36 = vpop.permute.xlu0 %246 }
 0x132   : > { %v257_v35 = vcombine.low %v244_v31, %v245_v32  ;;  %v249_v37 = vpop.permute.xlu1 %248 }
 0x133   : > { %v251_v38 = vsel %vm250_vm9, %v247_v36, %v249_v37  ;;  %v252_v39 = vsel %vm250_vm9, %v249_v37, %v247_v36 }
 0x134   : > { %v253_v40 = vmul.f32 %v443_v33, %v251_v38  ;;  %v254_v41 = vmul.f32 %v444_v34, %v252_v39  ;;  %v259_v42 = vadd.f32 %v257_v35, %v233_v21 }
 0x136   : > { %v262_v43 = vcombine.low %v253_v40, %v254_v41 }
 0x138   : > { %v264_v44 = vadd.f32 %v262_v43, %v259_v42 }
 0x13a   : > { %v265_v45 = vmul.f32 0.11111111, %v264_v44 }
 0x13c   : > { %v266_v46 = vsub.f32 %v772_v0, %v265_v45 }
 0x13e   : > { %v267_v47 = vmul.f32 %v266_v46, %v266_v46 }
 0x140   : > { %271 = vrot.lane.b32.xlu0 %v267_v47, %s636_s29  ;;  %v269_v48 = vcombine.high %v267_v47, %v267_v47 }
 0x142   : > { %273 = vrot.lane.b32.xlu1 %v269_v48, %s636_s29 }
 0x144   : > { %279 = vrot.lane.b32.xlu0 %v267_v47, %s635_s27 }
 0x146   : > { %281 = vrot.lane.b32.xlu1 %v269_v48, %s635_s27 }
 0x1b2   : > { %v272_v49 = vpop.permute.xlu0 %271 }
 0x1b4   : > { %v274_v50 = vpop.permute.xlu1 %273 }
 0x1b5   : > { %v276_v51 = vsel %vm210_vm3, %v274_v50, %v272_v49  ;;  %v275_v53 = vsel %vm210_vm3, %v272_v49, %v274_v50 }
 0x1b6   : > { %v277_v52 = vmul.f32 %v439_v9, %v276_v51  ;;  %v280_v55 = vpop.permute.xlu0 %279 }
 0x1b8   : > { %v289_v54 = vcombine.low %v277_v52, %v275_v53  ;;  %v282_v56 = vpop.permute.xlu1 %281 }
 0x1b9   : > { %v284_v57 = vsel %vm219_vm2, %v282_v56, %v280_v55  ;;  %v283_v59 = vsel %vm219_vm2, %v280_v55, %v282_v56 }
 0x1ba   : > { %v286_v58 = vmul.f32 %v788_v8, %v284_v57  ;;  %v291_v60 = vadd.f32 %v289_v54, %v267_v47 }
 0x1bc   : > { %v294_v61 = vcombine.low %v283_v59, %v286_v58 }
 0x1be   : > { %v296_v62 = vadd.f32 %v294_v61, %v291_v60 }
 0x1c0   : > { %300 = vrot.lane.b32.xlu0 %v296_v62, %s638_s18  ;;  %v298_v63 = vcombine.high %v296_v62, %v296_v62 }
 0x1c2   : > { %302 = vrot.lane.b32.xlu1 %v298_v63, %s638_s18 }
 0x1c4   : > { %308 = vrot.lane.b32.xlu0 %v296_v62, %s639_s30 }
 0x1c6   : > { %310 = vrot.lane.b32.xlu1 %v298_v63, %s639_s30 }
 0x232   : > { %v301_v0 = vpop.permute.xlu0 %300 }
 0x234   : > { %v303_v1 = vpop.permute.xlu1 %302 }
 0x235   : > { %v304_v2 = vsel %vm241_vm6, %v301_v0, %v303_v1  ;;  %v305_v4 = vsel %vm241_vm6, %v303_v1, %v301_v0 }
 0x236   : > { %v306_v5 = vmul.f32 %v441_v26, %v305_v4  ;;  %v307_v6 = vmul.f32 %v442_v27, %v304_v2  ;;  %v309_v8 = vpop.permute.xlu0 %308 }
 0x238   : > { %v318_v7 = vcombine.low %v306_v5, %v307_v6  ;;  %v311_v9 = vpop.permute.xlu1 %310 }
 0x239   : > { %v312_v10 = vsel %vm250_vm9, %v309_v8, %v311_v9  ;;  %v313_v11 = vsel %vm250_vm9, %v311_v9, %v309_v8 }
 0x23a   : > { %v314_v12 = vmul.f32 %v443_v33, %v312_v10  ;;  %v315_v13 = vmul.f32 %v444_v34, %v313_v11  ;;  %v320_v14 = vadd.f32 %v318_v7, %v296_v62 }
 0x23c   : > { %v323_v15 = vcombine.low %v314_v12, %v315_v13 }
 0x23e   : > { %v325_v16 = vadd.f32 %v323_v15, %v320_v14 }
 0x240   : > { %v326_v17 = vmul.f32 0.11111111, %v325_v16 }
 0x242   : > { %327 = vst [vmem:[%s150_s3] sm:$0xff] %v326_v17 }
 0x243   : > { %563 = shalt.err (!%p560_p6)
}
 0x244   : > { %s564_s23 = scalar_lea.hbm %s847_s13, 128  ;;  %s568_s26 = scalar_lea.hbm %s897_s1, 256 }
 0x245   : > { %p565_p4 = scmp.ne.s32.totalorder %s847_s13, %s564_s23  ;;  %p569_p1 = scmp.lt.u32.totalorder %s847_s13, %s897_s1 }
 0x246   : > { %p570_p2 = scmp.lt.u32.totalorder %s568_s26, %s564_s23  ;;  %p572_p8 = scmp.lt.u32.totalorder %s564_s23, %s847_s13 }
 0x247   : > { %p566_p10 = pnand %p565_p4, %p906_p9 }
 0x248   : > { %p571_p5 = por %p570_p2, %p569_p1 }
 0x249   : > { %p567_p12 = pneg %p566_p10 }
 0x24a   : > { %p573_p11 = por %p572_p8, %p571_p5 }
 0x24c   : > { %p574_p0 = pnand %p573_p11, %p567_p12 }
 0x24e   : > { %577 = shalt.err (!%p574_p0)
}
 0x24f   : > { %454 = dma.vmem_to_hbm [thread:$0]  (%p906_p9), %s849_s4, 128, %s847_s13, %s329_s15  }
 0x250 PF: > { %s357_s29 = sand.u32 1, %s612_s6   ;;  %p907_p7 = scmp.ne.s32.totalorder %s902_s21, 0 }
 0x251   : > { %p908_p13 = scmp.ge.s32.totalorder %s632_s11, 2  ;;  %s358_s18 = scalar_lea.sflag [#allocation4], %s357_s29 }
 0x253   : > { %p461_p3 = pnand %p908_p13, %p907_p7 }
 0x255   : > { %607 = dma.done.wait (!%p461_p3), %s358_s18, 128  }
 0x256   : > { %609 = vsyncadd (!%p461_p3), %s358_s18, 4294967168  ;;  %s17_s11 = sadd.s32 1, %s632_s11   ;;  %s909_s6 = smov %s616_s7 }
 0x257   : > { %p14_p6 = scmp.ge.s32.totalorder %s17_s11, 4   ;;  %s910_s7 = smov %s620_s8 }
 0x258   : > { %s911_s8 = smov %s707_s20  ;;  %s912_s9 = smov %s628_s10 }
 0x259   : > { %s913_s10 = smov %s915_s14  ;;  %16 = sbr.rel (!%p14_p6) target bundleno = 6 (0x6), region = 69 }
 0x260   :  { %363 = vsyncpa [#allocation3], 1 }
 0x261   :  { %365 = vsyncpa [#allocation3 + $0x1], 1 }
 0x262   :  { %366 = vsyncpa [#allocation4], 1 }
 0x263   :  { %368 = vsyncpa [#allocation4 + $0x1], 1 }

</bundles_post_ra>
